<compile_context>
chip_gen: v5e
topology: v5e:2x2
jax: 0.10.0
libtpu: 0.0.40
codegen_flags: <defaults>
</compile_context>

<pallas_src>
import functools

import jax
import jax.numpy as jnp
from jax.experimental import pallas as pl
from jax.experimental.pallas import tpu as pltpu

LANE = 128          # lane width
TILE_R_MAX = 2048   # rows per block -> (2048, 128) f32 = 1 MiB per input block
NUM_CORES = 2       # leading "parallel" axis (engages v7x's 2nd TensorCore)


def _hinge_kernel(out_ref, tgt_ref, partial_ref, acc_ref, *,
                  tile_r, tiles_per_core, full_rows, rem_lanes, acc_rows):
    i = pl.program_id(0)   # core axis ("parallel")
    j = pl.program_id(1)   # row-tile axis within this core ("arbitrary")

    @pl.when(j == 0)
    def _():
        acc_ref[...] = jnp.zeros_like(acc_ref)

    # Mask built from the *logical* (unclamped) tile index so out-of-range
    # tiles, partial last blocks and lane padding contribute exactly zero.
    gt = i * tiles_per_core + j
    row_ids = gt * tile_r + jax.lax.broadcasted_iota(jnp.int32, (tile_r, LANE), 0)
    lane_ids = jax.lax.broadcasted_iota(jnp.int32, (tile_r, LANE), 1)
    mask = (row_ids < full_rows) | ((row_ids == full_rows) & (lane_ids < rem_lanes))

    o = out_ref[...].astype(jnp.float32)     # native-dtype DMA, upcast on VPU
    t = tgt_ref[...].astype(jnp.float32)
    h = jnp.maximum(1.0 - o * t, 0.0)        # hinge_loss[hinge_loss < 0] = 0
    h = jnp.where(mask, h, 0.0)

    # vreg-shaped accumulation: collapse the tile onto (acc_rows, LANE) with
    # elementwise (VPU) adds only; cross-lane work is deferred to the end.
    if acc_rows == 8:
        acc_ref[...] += h.reshape(-1, 8, LANE).sum(axis=0)
    else:
        acc_ref[...] += h.sum(axis=0, keepdims=True)

    @pl.when(j == tiles_per_core - 1)
    def _():
        # Lane-dense (1, 128) partial per core; final reduce happens outside.
        partial_ref[...] = jnp.sum(acc_ref[...], axis=0, keepdims=True)


def hinge_loss(output, target):
    assert output.shape == target.shape
    total = int(output.size)

    flat_o = output.reshape(-1)   # no wrapper cast: keep native dtype
    flat_t = target.reshape(-1)

    # Pad only when the flat length is not lane-aligned (<=127 elements;
    # values are irrelevant because the kernel masks them out).
    rem_lanes = total % LANE
    pad_n = (LANE - rem_lanes) % LANE
    if pad_n:
        flat_o = jnp.pad(flat_o, (0, pad_n))
        flat_t = jnp.pad(flat_t, (0, pad_n))

    rows = (total + pad_n) // LANE
    o2 = flat_o.reshape(rows, LANE)
    t2 = flat_t.reshape(rows, LANE)

    tile_r = rows if rows <= TILE_R_MAX else TILE_R_MAX
    n_tiles = -(-rows // tile_r)
    tiles_per_core = -(-n_tiles // NUM_CORES)
    acc_rows = 8 if tile_r % 8 == 0 else 1
    full_rows = total // LANE

    def in_map(i, j):
        # Clamp so out-of-range logical tiles re-read the last valid block;
        # their contribution is masked to zero inside the kernel.
        return (jnp.minimum(i * tiles_per_core + j, n_tiles - 1), 0)

    kernel = functools.partial(
        _hinge_kernel,
        tile_r=tile_r,
        tiles_per_core=tiles_per_core,
        full_rows=full_rows,
        rem_lanes=rem_lanes,
        acc_rows=acc_rows,
    )

    partials = pl.pallas_call(
        kernel,
        out_shape=jax.ShapeDtypeStruct((1, NUM_CORES * LANE), jnp.float32),
        grid_spec=pltpu.PrefetchScalarGridSpec(
            num_scalar_prefetch=0,
            grid=(NUM_CORES, tiles_per_core),
            in_specs=[
                pl.BlockSpec((tile_r, LANE), in_map),
                pl.BlockSpec((tile_r, LANE), in_map),
            ],
            out_specs=pl.BlockSpec((1, LANE), lambda i, j: (0, i)),
            scratch_shapes=[pltpu.VMEM((acc_rows, LANE), jnp.float32)],
        ),
        compiler_params=pltpu.CompilerParams(
            dimension_semantics=("parallel", "arbitrary"),
        ),
    )(o2, t2)

    return jnp.sum(partials) / total


if __name__ == "__main__":
    key = jax.random.PRNGKey(0)
    k_out, k_tgt = jax.random.split(key)

    # Small NCHW-shaped inputs (elementwise op, any matching shape works).
    shape = (2, 4, 16, 16)
    output = jax.random.normal(k_out, shape, dtype=jnp.float32)
    # +/-1 labels, typical for hinge loss.
    target = jnp.sign(jax.random.normal(k_tgt, shape, dtype=jnp.float32))
    target = jnp.where(target == 0, 1.0, target)

    loss = hinge_loss(output, target)
    jax.block_until_ready(loss)

    # Pure-JAX reference check.
    ref = jnp.mean(jnp.maximum(1.0 - output * target, 0.0))
    assert jnp.allclose(loss, ref, rtol=1e-6, atol=1e-6), (loss, ref)

    print("KERNEL_OK")
</pallas_src>

<mosaic_0001>
module attributes {stable_mosaic.version = 11 : i64} {
  func.func @_hinge_kernel(%arg0: i32, %arg1: i32, %arg2: memref<16x128xf32, #tpu.memory_space<vmem>>, %arg3: memref<16x128xf32, #tpu.memory_space<vmem>>, %arg4: memref<1x128xf32, #tpu.memory_space<vmem>>, %arg5: memref<8x128xf32, #tpu.memory_space<vmem>>) attributes {dimension_semantics = [#tpu.dimension_semantics<parallel>, #tpu.dimension_semantics<arbitrary>], iteration_bounds = array<i64: 2, 1>, scalar_prefetch = 0 : i64, scratch_operands = 1 : i64, tpu.core_type = #tpu.core_type<tc>, window_params = [{transform_indices = @transform_0, window_bounds = array<i64: 16, 128>}, {transform_indices = @transform_1, window_bounds = array<i64: 16, 128>}, {transform_indices = @transform_2, window_bounds = array<i64: 1, 128>}]} {
    %c0_i32 = arith.constant 0 : i32
    %0 = arith.cmpi eq, %arg1, %c0_i32 : i32
    %1 = arith.extui %0 : i1 to i32
    %c0_i32_0 = arith.constant 0 : i32
    %2 = arith.cmpi ne, %1, %c0_i32_0 : i32
    scf.if %2 {
      %cst_16 = arith.constant 0.000000e+00 : f32
      %35 = vector.broadcast %cst_16 : f32 to vector<8x128xf32>
      %c0_17 = arith.constant 0 : index
      %c0_18 = arith.constant 0 : index
      %36 = vector.load %arg5[%c0_17, %c0_18] : memref<8x128xf32, #tpu.memory_space<vmem>>, vector<8x128xf32>
      tpu.vector_store %arg5[%c0_17, %c0_18], %35 {strides = array<i32>} : memref<8x128xf32, #tpu.memory_space<vmem>>, vector<8x128xf32>,
    } else {
    }
    %c1_i32 = arith.constant 1 : i32
    %3 = arith.muli %arg0, %c1_i32 : i32
    %4 = arith.addi %3, %arg1 : i32
    %c16_i32 = arith.constant 16 : i32
    %5 = arith.muli %4, %c16_i32 : i32
    %6 = tpu.iota {dimensions = array<i32: 0>} : vector<16x128xi32>
    %7 = vector.broadcast %5 : i32 to vector<16x128xi32>
    %8 = arith.addi %7, %6 : vector<16x128xi32>
    %9 = tpu.iota {dimensions = array<i32: 1>} : vector<16x128xi32>
    %c16_i32_1 = arith.constant 16 : i32
    %10 = vector.broadcast %c16_i32_1 : i32 to vector<16x128xi32>
    %11 = arith.cmpi slt, %8, %10 : vector<16x128xi32>
    %c16_i32_2 = arith.constant 16 : i32
    %12 = vector.broadcast %c16_i32_2 : i32 to vector<16x128xi32>
    %13 = arith.cmpi eq, %8, %12 : vector<16x128xi32>
    %c0_i32_3 = arith.constant 0 : i32
    %14 = vector.broadcast %c0_i32_3 : i32 to vector<16x128xi32>
    %15 = arith.cmpi slt, %9, %14 : vector<16x128xi32>
    %16 = arith.andi %13, %15 : vector<16x128xi1>
    %17 = arith.ori %11, %16 : vector<16x128xi1>
    %c0 = arith.constant 0 : index
    %c0_4 = arith.constant 0 : index
    %18 = vector.load %arg2[%c0, %c0_4] : memref<16x128xf32, #tpu.memory_space<vmem>>, vector<16x128xf32>
    %c0_5 = arith.constant 0 : index
    %c0_6 = arith.constant 0 : index
    %19 = vector.load %arg3[%c0_5, %c0_6] : memref<16x128xf32, #tpu.memory_space<vmem>>, vector<16x128xf32>
    %20 = arith.mulf %18, %19 : vector<16x128xf32>
    %cst = arith.constant 1.000000e+00 : f32
    %21 = vector.broadcast %cst : f32 to vector<16x128xf32>
    %22 = arith.subf %21, %20 : vector<16x128xf32>
    %cst_7 = arith.constant 0.000000e+00 : f32
    %23 = vector.broadcast %cst_7 : f32 to vector<16x128xf32>
    %24 = arith.maximumf %22, %23 : vector<16x128xf32>
    %cst_8 = arith.constant 0.000000e+00 : f32
    %25 = vector.broadcast %cst_8 : f32 to vector<16x128xf32>
    %26 = arith.select %17, %24, %25 : vector<16x128xi1>, vector<16x128xf32>
    %c0_9 = arith.constant 0 : index
    %c0_10 = arith.constant 0 : index
    %27 = vector.load %arg5[%c0_9, %c0_10] : memref<8x128xf32, #tpu.memory_space<vmem>>, vector<8x128xf32>
    %28 = vector.shape_cast %26 : vector<16x128xf32> to vector<2x8x128xf32>
    %cst_11 = arith.constant dense<0.000000e+00> : vector<8x128xf32>
    %29 = vector.multi_reduction <add>, %28, %cst_11 [0] : vector<2x8x128xf32> to vector<8x128xf32>
    %30 = arith.addf %27, %29 : vector<8x128xf32>
    %c0_12 = arith.constant 0 : index
    %c0_13 = arith.constant 0 : index
    %31 = vector.load %arg5[%c0_12, %c0_13] : memref<8x128xf32, #tpu.memory_space<vmem>>, vector<8x128xf32>
    tpu.vector_store %arg5[%c0_12, %c0_13], %30 {strides = array<i32>} : memref<8x128xf32, #tpu.memory_space<vmem>>, vector<8x128xf32>,
    %c0_i32_14 = arith.constant 0 : i32
    %32 = arith.cmpi eq, %arg1, %c0_i32_14 : i32
    %33 = arith.extui %32 : i1 to i32
    %c0_i32_15 = arith.constant 0 : i32
    %34 = arith.cmpi ne, %33, %c0_i32_15 : i32
    scf.if %34 {
      %c0_16 = arith.constant 0 : index
      %c0_17 = arith.constant 0 : index
      %35 = vector.load %arg5[%c0_16, %c0_17] : memref<8x128xf32, #tpu.memory_space<vmem>>, vector<8x128xf32>
      %cst_18 = arith.constant dense<0.000000e+00> : vector<128xf32>
      %36 = vector.multi_reduction <add>, %35, %cst_18 [0] : vector<8x128xf32> to vector<128xf32>
      %37 = vector.shape_cast %36 : vector<128xf32> to vector<1x128xf32>
      %c0_19 = arith.constant 0 : index
      %c0_20 = arith.constant 0 : index
      %38 = vector.load %arg4[%c0_19, %c0_20] : memref<1x128xf32, #tpu.memory_space<vmem>>, vector<1x128xf32>
      tpu.vector_store %arg4[%c0_19, %c0_20], %37 {strides = array<i32>} : memref<1x128xf32, #tpu.memory_space<vmem>>, vector<1x128xf32>,
    } else {
    }
    return
  }
  func.func @transform_0(%arg0: i32, %arg1: i32) -> (i32, i32) {
    %c1_i32 = arith.constant 1 : i32
    %0 = arith.muli %arg0, %c1_i32 : i32
    %1 = arith.addi %0, %arg1 : i32
    %c0_i32 = arith.constant 0 : i32
    %2 = arith.minsi %1, %c0_i32 : i32
    %c0_i32_0 = arith.constant 0 : i32
    %c0_i32_1 = arith.constant 0 : i32
    return %2, %c0_i32_0 : i32, i32
  }
  func.func @transform_1(%arg0: i32, %arg1: i32) -> (i32, i32) {
    %c1_i32 = arith.constant 1 : i32
    %0 = arith.muli %arg0, %c1_i32 : i32
    %1 = arith.addi %0, %arg1 : i32
    %c0_i32 = arith.constant 0 : i32
    %2 = arith.minsi %1, %c0_i32 : i32
    %c0_i32_0 = arith.constant 0 : i32
    %c0_i32_1 = arith.constant 0 : i32
    return %2, %c0_i32_0 : i32, i32
  }
  func.func @transform_2(%arg0: i32, %arg1: i32) -> (i32, i32) {
    %c0_i32 = arith.constant 0 : i32
    %c0_i32_0 = arith.constant 0 : i32
    return %c0_i32, %arg0 : i32, i32
  }
}

</mosaic_0001>

<bundles_post_ra>
// kernel: tpu_custom_call.1
= control target key start
LH: loop header
LB: loop body
LE: loop exit
PB: predicated region body
PF: predicated region fallthrough
CT: control target
= control target key end

     0   :  { %7 = vsyncpa [#allocation4], 0  ;;  %s872_s0 = inlined_call_operand.hbm [shape: f32[16,128], index: 0, kind: input, shape index: {}]   ;;  %s873_s1 = inlined_call_operand.hbm [shape: f32[16,128], index: 1, kind: input, shape index: {}]   ;;  %s874_s2 = inlined_call_operand.hbm [shape: f32[1,256], index: 2, kind: output, shape index: {}]  }
   0x1   :  { %9 = vsyncpa [#allocation4 + $0x1], 0 }
   0x2   :  { %10 = vsyncpa [#allocation7], 0 }
   0x3   :  { %12 = vsyncpa [#allocation7 + $0x1], 0 }
   0x4   :  { %13 = vsyncpa [#allocation5], 0 }
   0x5   :  { %15 = vsyncpa [#allocation5 + $0x1], 0  ;;  %s703_s9 = smov 0   ;;  %s705_s10 = smov 0  }
   0x6   :  { %s707_s11 = smov 0   ;;  %s709_s12 = smov 0  }
   0x7   :  { %s711_s13 = smov 0   ;;  %s713_s14 = smov 0  }
   0x8   :  { %s715_s15 = smov 0   ;;  %s717_s16 = smov 0  }
   0x9 LB: > { %s404_s17 = sadd.s32 4294967295, %s682_s16   ;;  %s405_s18 = sadd.s32 4294967294, %s682_s16   ;;  %s682_s16 = sphi %s717_s16, %s21_s16   ;;  %s678_s15 = sphi %s715_s15, %s886_s15   ;;  %s674_s14 = sphi %s713_s14, %s885_s14   ;;  %s670_s13 = sphi %s711_s13, %s862_s13   ;;  %s666_s12 = sphi %s709_s12, %s884_s12   ;;  %s662_s11 = sphi %s707_s11, %s883_s11   ;;  %s658_s10 = sphi %s705_s10, %s882_s10   ;;  %s654_s9 = sphi %s703_s9, %s881_s9  }
   0xa   : > { %s33_s19 = sadd.s32 1, %s678_s15  ;;  %p651_p1 = scmp.ne.s32.totalorder %s670_s13, 0 }
   0xb   : > { %p35_p0 = scmp.ge.s32.totalorder %s33_s19, 2  ;;  %p54_p2 = scmp.eq.s32.totalorder %s682_s16, 0 }
   0xc   : > { %p59_p3 = scmp.ne.s32.totalorder %s670_s13, %s666_s12  ;;  %p60_p5 = scmp.eq.s32.totalorder %s404_s17, 0 }
   0xd   : > { %s888_s19 = smov (%p35_p0, %s33_s19), 0  ;;  %p749_p4 = por %p651_p1, %p54_p2 }
   0xe   : > { %p753_p6 = por %p60_p5, %p59_p3  ;;  %s101_s22 = ssub.s32 %s678_s15, %s888_s19 }
   0xf   : > { %p102_p7 = scmp.eq.s32.totalorder %s101_s22, 0  ;;  %s104_s23 = sadd.s32 1, %s662_s11 }
  0x10   : > { %p114_p8 = scmp.ne.s32.totalorder %s662_s11, %s658_s10  ;;  %p115_p9 = scmp.eq.s32.totalorder %s404_s17, 1 }
  0x11   : > { %s761_s24 = scalar_select %p102_p7, %s662_s11, %s104_s23  }
  0x12   : > { %p120_p10 = scmp.ne.s32.totalorder %s658_s10, %s654_s9  ;;  %p121_p11 = scmp.eq.s32.totalorder %s405_s18, 1 }
  0x13   : > { %p767_p12 = por %p115_p9, %p114_p8  ;;  %p407_p13 = scmp.ge.s32.totalorder %s682_s16, 2 }
  0x14   : > { %p772_p0 = por %p121_p11, %p120_p10  ;;  %p439_p1 = scmp.lt.s32.totalorder %s682_s16, 2 }
  0x15   : > { %s154_s29 = sshll.u32 %s872_s0, 4  ;;  %s684_s30 = smov [#allocation3]   ;;  %s155_s29 = int_to_ptr.hbm [resolvable:$true] %s154_s29 }
  0x16   : > { %s156_s3 = sshll.u32 %s684_s30, 4  ;;  %p782_p2 = pnand %p439_p1, %p749_p4  ;;  %s157_s3 = int_to_ptr.vmem [resolvable:$true] %s156_s3 }
  0x17   : > { %p414_p3 = scmp.ge.s32.totalorder %s682_s16, 1  ;;  %p189_p5 = scmp.lt.s32.totalorder %s682_s16, 3 }
  0x18   : > { %s515_s5 = sshra.s32 %s155_s29, 4  ;;  %p519_p8 = pneg %p782_p2  ;;  %s516_s5 = int_to_ptr.hbm [resolvable:$true] %s515_s5 }
  0x19   : > { %s517_s6 = scalar_lea.hbm %s516_s5, 16  ;;  %s522_s12 = scalar_lea.hbm %s872_s0, 16 }
  0x1a   : > { %p518_p7 = scmp.ne.s32.totalorder %s516_s5, %s517_s6  ;;  %p524_p4 = scmp.lt.s32.totalorder %s522_s12, %s517_s6 }
  0x1c   : > { %p520_p9 = pnand %p519_p8, %p518_p7 }
  0x1e   : > { %p521_p10 = pneg %p520_p9 }
  0x20   : > { %p526_p11 = pnand %p524_p4, %p521_p10 }
  0x22   : > { %529 = shalt.err (!%p526_p11)
}
  0x23   : > { %s685_s17 = smov 128   ;;  %s686_s18 = smov 8  }
  0x24   : > { %431 = dma.hbm_to_vmem [thread:$0]  (!%p782_p2), %s155_s29, 256, %s157_s3, [#allocation4], %s685_s17, %s685_s17, %s686_s18  }
  0x25   : > { %p802_p1 = pnand %p414_p3, %p189_p5  ;;  %s179_s27 = sshll.u32 %s873_s1, 4  ;;  %s180_s27 = int_to_ptr.hbm [resolvable:$true] %s179_s27 }
  0x26   : > { %s687_s28 = smov [#allocation6]   ;;  %s545_s5 = sshra.s32 %s180_s27, 4  ;;  %s546_s5 = int_to_ptr.hbm [resolvable:$true] %s545_s5 }
  0x27   : > { %s181_s30 = sshll.u32 %s687_s28, 4  ;;  %s547_s6 = scalar_lea.hbm %s546_s5, 16  ;;  %s182_s30 = int_to_ptr.vmem [resolvable:$true] %s181_s30 }
  0x28   : > { %p548_p7 = scmp.ne.s32.totalorder %s546_s5, %s547_s6  ;;  %s552_s7 = scalar_lea.hbm %s873_s1, 16 }
  0x29   : > { %p554_p3 = scmp.lt.s32.totalorder %s552_s7, %s547_s6 }
  0x2a   : > { %p550_p9 = pnand %p548_p7, %p519_p8 }
  0x2c   : > { %p551_p10 = pneg %p550_p9 }
  0x2e   : > { %p556_p5 = pnand %p554_p3, %p551_p10 }
  0x30   : > { %559 = shalt.err (!%p556_p5)
}
  0x31   : > { %434 = dma.hbm_to_vmem [thread:$0]  (!%p782_p2), %s180_s27, 256, %s182_s30, [#allocation7], %s685_s17, %s685_s17, %s686_s18  }
  0x32   : > { %193 = sbr.rel (%p802_p1) target bundleno = 85 (0x55), region = 28  ;;  %s195_s8 = sand.u32 (!%p802_p1), 1, %s670_s13  }
  0x33   : > { %s415_s12 = sshll.u32 (!%p802_p1), %s195_s8, 4  ;;  %s196_s22 = scalar_lea.sflag (!%p802_p1), [#allocation4], %s195_s8 }
  0x34   : > { %s199_s23 = scalar_lea.vmem (!%p802_p1), [#allocation3], %s415_s12 }
  0x37   : > { %640 = dma.done.wait (%p753_p6), %s196_s22, 256  }
  0x38   : > { %642 = vsyncadd (%p753_p6), %s196_s22, 4294967040  ;;  %s206_s28 = scalar_lea.sflag [#allocation7], %s195_s8  ;;  %s209_s5 = scalar_lea.vmem [#allocation6], %s415_s12 }
  0x39   : > { %644 = dma.done.wait (%p753_p6), %s206_s28, 256  }
  0x3a   : > { %646 = vsyncadd (%p753_p6), %s206_s28, 4294967040  ;;  %v250_v0 = vlaneseq  ;;  %s417_s4 = sshll.u32 %s674_s14, 4  ;;  %v267_v5 = vld [vmem:[%s199_s23] sm:$0xff]  ;;  %v268_v6 = vld [vmem:[%s199_s23 + $0x8] sm:$0xff]  ;;  %s233_s21 = sand.u32 1, %s658_s10  }
  0x3b   : > { %v253_v3 = vstv %s417_s4  ;;  %v269_v7 = vld [vmem:[%s209_s5] sm:$0xff]  ;;  %v270_v9 = vld [vmem:[%s209_s5 + $0x8] sm:$0xff]  ;;  %s303_s20 = scalar_lea.hbm %s874_s2, %s674_s14  ;;  %s234_s27 = scalar_lea.vmem [#allocation8], %s233_s21 }
  0x3c   : > { %v251_v1 = vshrl.u32 %v250_v0, 7  ;;  %v271_v10 = vmul.f32 %v269_v7, %v267_v5  ;;  %v272_v11 = vmul.f32 %v270_v9, %v268_v6  ;;  %s305_s30 = sshll.u32 %s234_s27, 4  ;;  %s307_s6 = sshll.u32 %s303_s20, 4  ;;  %s306_s30 = int_to_ptr.vmem [resolvable:$true] %s305_s30  ;;  %s308_s6 = int_to_ptr.hbm [resolvable:$true] %s307_s6 }
  0x3d   : > { %s295_s29 = scalar_lea.sflag [#allocation5], %s233_s21  ;;  %s589_s3 = sshra.s32 %s308_s6, 4  ;;  %s590_s3 = int_to_ptr.hbm [resolvable:$true] %s589_s3 }
  0x3e   : > { %v252_v2 = vadd.s32 8, %v251_v1  ;;  %v254_v4 = vadd.s32 %v253_v3, %v251_v1  ;;  %v273_v12 = vsub.f32 1.0, %v271_v10  ;;  %v274_v13 = vsub.f32 1.0, %v272_v11  ;;  %s591_s7 = scalar_lea.hbm %s590_s3, 1  ;;  %s595_s14 = scalar_lea.hbm %s874_s2, 2 }
  0x3f   : > { %p592_p6 = scmp.ne.s32.totalorder %s590_s3, %s591_s7  ;;  %p596_p4 = scmp.lt.s32.totalorder %s590_s3, %s874_s2 }
  0x40   : > { %v255_v8 = vadd.s32 %v253_v3, %v252_v2  ;;  %vm258_vm0 = vcmp.lt.s32.totalorder %v254_v4, 16  ;;  %v275_v14 = vmax.f32 %v273_v12, 0.0  ;;  %v276_v15 = vmax.f32 %v274_v13, 0.0  ;;  %p597_p11 = scmp.lt.s32.totalorder %s595_s14, %s591_s7 }
  0x41   : > { %p593_p2 = pnand %p592_p6, %p767_p12 }
  0x42   : > { %vm259_vm1 = vcmp.lt.s32.totalorder %v255_v8, 16  ;;  %v277_v16 = vsel %vm258_vm0, %v275_v14, 0.0  ;;  %p598_p1 = por %p597_p11, %p596_p4 }
  0x43   : > { %v278_v17 = vsel %vm259_vm1, %v276_v15, 0.0  ;;  %p594_p8 = pneg %p593_p2 }
  0x44   : > { %v280_v18 = vadd.f32 %v278_v17, %v277_v16 }
  0x45   : > { %p599_p7 = pnand %p598_p1, %p594_p8 }
  0x46   : > { %v287_v19 = vrot.slane %v280_v18, 4 }
  0x48   : > { %v288_v20 = vadd.f32 %v287_v19, %v280_v18 }
  0x4a   : > { %v289_v21 = vrot.slane %v288_v20, 2 }
  0x4c   : > { %v290_v22 = vadd.f32 %v289_v21, %v288_v20 }
  0x4e   : > { %v291_v23 = vrot.slane %v290_v22, 1 }
  0x50   : > { %v292_v24 = vadd.f32 %v291_v23, %v290_v22 }
  0x52   : > { %293 = vst [vmem:[%s234_s27] sm:$0x1] %v292_v24 }
  0x53   : > { %602 = shalt.err (!%p599_p7)
}
  0x54   : > { %426 = dma.vmem_to_hbm [thread:$0]  (%p767_p12), %s306_s30, 16, %s308_s6, %s295_s29  }
  0x55 PF: > { %s319_s28 = sand.u32 1, %s654_s9   ;;  %p436_p9 = pnand %p407_p13, %p772_p0 }
  0x56   : > { %s320_s5 = scalar_lea.sflag [#allocation5], %s319_s28 }
  0x57   : > { %p437_p10 = pneg %p436_p9 }
  0x59   : > { %648 = dma.done.wait (%p437_p10), %s320_s5, 16  }
  0x5a   : > { %650 = vsyncadd (%p437_p10), %s320_s5, 4294967280  ;;  %s21_s16 = sadd.s32 1, %s682_s16   ;;  %s881_s9 = smov %s658_s10 }
  0x5b   : > { %p18_p3 = scmp.ge.s32.totalorder %s21_s16, 4   ;;  %s882_s10 = smov %s662_s11 }
  0x5c   : > { %s883_s11 = smov %s761_s24  ;;  %s884_s12 = smov %s670_s13 }
  0x5d   : > { %s862_s13 = smov 0   ;;  %s885_s14 = smov %s678_s15 }
  0x5e   : > { %s886_s15 = smov %s888_s19  ;;  %20 = sbr.rel (!%p18_p3) target bundleno = 9 (0x9), region = 94 }
  0x63   :  { %325 = vsyncpa [#allocation4], 1 }
  0x64   :  { %327 = vsyncpa [#allocation4 + $0x1], 1 }
  0x65   :  { %328 = vsyncpa [#allocation7], 1 }
  0x66   :  { %330 = vsyncpa [#allocation7 + $0x1], 1 }
  0x67   :  { %331 = vsyncpa [#allocation5], 1 }
  0x68   :  { %333 = vsyncpa [#allocation5 + $0x1], 1 }

</bundles_post_ra>
